<compile_context>
chip_gen: v7x
topology: tpu7x:2x2x1
jax: 0.10.0
libtpu: 0.0.40
codegen_flags: <defaults>
</compile_context>

<pallas_src>
import functools
import math

import jax
import jax.numpy as jnp
from jax import lax
from jax.experimental import pallas as pl
from jax.experimental.pallas import tpu as pltpu

LANES = 128
MAX_BLOCK_ROWS = 512   # (512,128) f32 block = 256 KiB per buffer
MAX_CHUNK_ROWS = 32    # (32,128) f32 chunk = 4 vregs


def _mlp_kernel(x_ref, w1_ref, b1_ref, w2_ref, b2_ref, o_ref, *, n_hidden, chunk):
    # x_ref/o_ref: (block_rows, 128) f32 in VMEM, batch lane-dense.
    # w1_ref/b1_ref/w2_ref: (n_hidden,) f32 in SMEM; b2_ref: (1,) f32 in SMEM.

    # Hoist loop-invariant SMEM scalar reads out of the per-chunk loop:
    # read once per grid step, reuse for every chunk.
    w1 = [w1_ref[j] for j in range(n_hidden)]
    b1 = [b1_ref[j] for j in range(n_hidden)]
    w2 = [w2_ref[j] for j in range(n_hidden)]
    b2 = b2_ref[0]

    block_rows = x_ref.shape[0]
    n_chunks = block_rows // chunk

    def chunk_body(c, carry):
        r0 = pl.multiple_of(c * chunk, chunk)
        xs = x_ref[pl.ds(r0, chunk), :]            # <=4 vregs of x
        acc = jnp.full_like(xs, b2)                # <=4 independent acc chains
        for j in range(n_hidden):                  # unrolled VPU FMA loop
            h = jnp.maximum(xs * w1[j] + b1[j], 0.0)
            acc = acc + h * w2[j]
        o_ref[pl.ds(r0, chunk), :] = acc
        return carry

    lax.fori_loop(0, n_chunks, chunk_body, 0)


@jax.jit
def net_forward(x, w1, b1, w2, b2):
    """Forward pass of Net: relu(x @ W1.T + b1) @ W2.T + b2.

    x:  (N, 1) f32
    w1: (n_hidden, n_input=1)  torch Linear layout
    b1: (n_hidden,)
    w2: (n_output=1, n_hidden) torch Linear layout
    b2: (n_output=1,)
    """
    N, n_input = x.shape
    assert n_input == 1, "kernel is specialized to n_input == 1"
    n_hidden = w1.shape[0]
    n_output = w2.shape[0]
    assert n_output == 1, "kernel is specialized to n_output == 1"

    # Wrapper-side re-layout: batch onto the lane axis, padded to 128 lanes
    # and to a whole number of row blocks.
    rows = pl.cdiv(N, LANES)
    block_rows = min(MAX_BLOCK_ROWS, pl.cdiv(rows, 8) * 8)
    rows_pad = pl.cdiv(rows, block_rows) * block_rows
    n_pad = rows_pad * LANES
    chunk = math.gcd(block_rows, MAX_CHUNK_ROWS)

    x2d = jnp.pad(x.reshape(N).astype(jnp.float32), (0, n_pad - N)).reshape(
        rows_pad, LANES)

    w1_vec = w1.reshape(n_hidden).astype(jnp.float32)
    b1_vec = b1.reshape(n_hidden).astype(jnp.float32)
    w2_vec = w2.reshape(n_hidden).astype(jnp.float32)
    b2_vec = b2.reshape(1).astype(jnp.float32)

    kernel = functools.partial(_mlp_kernel, n_hidden=n_hidden, chunk=chunk)
    grid = (rows_pad // block_rows,)

    y2d = pl.pallas_call(
        kernel,
        out_shape=jax.ShapeDtypeStruct((rows_pad, LANES), jnp.float32),
        grid=grid,
        in_specs=[
            pl.BlockSpec((block_rows, LANES), lambda i: (i, 0)),     # x block
            pl.BlockSpec(memory_space=pltpu.MemorySpace.SMEM),       # w1 scalars
            pl.BlockSpec(memory_space=pltpu.MemorySpace.SMEM),       # b1 scalars
            pl.BlockSpec(memory_space=pltpu.MemorySpace.SMEM),       # w2 scalars
            pl.BlockSpec(memory_space=pltpu.MemorySpace.SMEM),       # b2 scalar
        ],
        out_specs=pl.BlockSpec((block_rows, LANES), lambda i: (i, 0)),
        compiler_params=pltpu.CompilerParams(
            dimension_semantics=("parallel",)),                      # v7x: 2 TCs
        cost_estimate=pl.CostEstimate(
            flops=5 * n_hidden * n_pad,
            transcendentals=0,
            bytes_accessed=8 * n_pad + 4 * (3 * n_hidden + 1)),
    )(x2d, w1_vec, b1_vec, w2_vec, b2_vec)

    # Undo the wrapper-side padding / re-layout.  (Padded tail lanes hold
    # garbage = relu(b1)*w2 + b2; the slice below discards them.  If a
    # downstream consumer can take the lane-dense (rows,128) slab directly,
    # return y2d instead and mask the last n_pad-N lanes.)
    return y2d.reshape(n_pad)[:N].reshape(N, 1)


def init_params(key, n_input=1, n_hidden=20, n_output=1):
    """Deterministic PyTorch-Linear-style init: U(-1/sqrt(fan_in), 1/sqrt(fan_in)),
    stored in torch (out_features, in_features) layout."""
    k1, k2, k3, k4 = jax.random.split(key, 4)
    bound1 = 1.0 / jnp.sqrt(jnp.float32(n_input))
    bound2 = 1.0 / jnp.sqrt(jnp.float32(n_hidden))
    w1 = jax.random.uniform(k1, (n_hidden, n_input), jnp.float32, -bound1, bound1)
    b1 = jax.random.uniform(k2, (n_hidden,), jnp.float32, -bound1, bound1)
    w2 = jax.random.uniform(k3, (n_output, n_hidden), jnp.float32, -bound2, bound2)
    b2 = jax.random.uniform(k4, (n_output,), jnp.float32, -bound2, bound2)
    return w1, b1, w2, b2


if __name__ == "__main__":
    key = jax.random.PRNGKey(0)
    n_input, n_hidden, n_output = 1, 20, 1
    N = 1000  # same as the PyTorch script: torch.linspace(-1, 1, 1000).unsqueeze(1)

    x = jnp.linspace(-1.0, 1.0, N, dtype=jnp.float32).reshape(N, 1)
    w1, b1, w2, b2 = init_params(key, n_input, n_hidden, n_output)

    y = net_forward(x, w1, b1, w2, b2)
    jax.block_until_ready(y)

    # Reference check in plain JAX (same math, torch-layout weights).
    y_ref = jnp.maximum(x @ w1.T + b1, 0.0) @ w2.T + b2
    assert y.shape == (N, n_output)
    assert jnp.allclose(y, y_ref, atol=1e-5, rtol=1e-5)

    print("KERNEL_OK")
</pallas_src>

<mosaic_0001>
module attributes {stable_mosaic.version = 11 : i64} {
  func.func @_mlp_kernel(%arg0: i32, %arg1: memref<8x128xf32, #tpu.memory_space<vmem>>, %arg2: memref<20xf32, #tpu.memory_space<smem>>, %arg3: memref<20xf32, #tpu.memory_space<smem>>, %arg4: memref<20xf32, #tpu.memory_space<smem>>, %arg5: memref<1xf32, #tpu.memory_space<smem>>, %arg6: memref<8x128xf32, #tpu.memory_space<vmem>>) attributes {dimension_semantics = [#tpu.dimension_semantics<parallel>], iteration_bounds = array<i64: 1>, scalar_prefetch = 0 : i64, scratch_operands = 0 : i64, tpu.core_type = #tpu.core_type<tc>, window_params = [{transform_indices = @transform_0, window_bounds = array<i64: 8, 128>}, {transform_indices = @transform_1, window_bounds = array<i64: 20>}, {transform_indices = @transform_2, window_bounds = array<i64: 20>}, {transform_indices = @transform_3, window_bounds = array<i64: 20>}, {transform_indices = @transform_4, window_bounds = array<i64: 1>}, {transform_indices = @transform_5, window_bounds = array<i64: 8, 128>}]} {
    %c0 = arith.constant 0 : index
    %0 = memref.load %arg2[%c0] : memref<20xf32, #tpu.memory_space<smem>>
    %c1 = arith.constant 1 : index
    %1 = memref.load %arg2[%c1] : memref<20xf32, #tpu.memory_space<smem>>
    %c2 = arith.constant 2 : index
    %2 = memref.load %arg2[%c2] : memref<20xf32, #tpu.memory_space<smem>>
    %c3 = arith.constant 3 : index
    %3 = memref.load %arg2[%c3] : memref<20xf32, #tpu.memory_space<smem>>
    %c4 = arith.constant 4 : index
    %4 = memref.load %arg2[%c4] : memref<20xf32, #tpu.memory_space<smem>>
    %c5 = arith.constant 5 : index
    %5 = memref.load %arg2[%c5] : memref<20xf32, #tpu.memory_space<smem>>
    %c6 = arith.constant 6 : index
    %6 = memref.load %arg2[%c6] : memref<20xf32, #tpu.memory_space<smem>>
    %c7 = arith.constant 7 : index
    %7 = memref.load %arg2[%c7] : memref<20xf32, #tpu.memory_space<smem>>
    %c8 = arith.constant 8 : index
    %8 = memref.load %arg2[%c8] : memref<20xf32, #tpu.memory_space<smem>>
    %c9 = arith.constant 9 : index
    %9 = memref.load %arg2[%c9] : memref<20xf32, #tpu.memory_space<smem>>
    %c10 = arith.constant 10 : index
    %10 = memref.load %arg2[%c10] : memref<20xf32, #tpu.memory_space<smem>>
    %c11 = arith.constant 11 : index
    %11 = memref.load %arg2[%c11] : memref<20xf32, #tpu.memory_space<smem>>
    %c12 = arith.constant 12 : index
    %12 = memref.load %arg2[%c12] : memref<20xf32, #tpu.memory_space<smem>>
    %c13 = arith.constant 13 : index
    %13 = memref.load %arg2[%c13] : memref<20xf32, #tpu.memory_space<smem>>
    %c14 = arith.constant 14 : index
    %14 = memref.load %arg2[%c14] : memref<20xf32, #tpu.memory_space<smem>>
    %c15 = arith.constant 15 : index
    %15 = memref.load %arg2[%c15] : memref<20xf32, #tpu.memory_space<smem>>
    %c16 = arith.constant 16 : index
    %16 = memref.load %arg2[%c16] : memref<20xf32, #tpu.memory_space<smem>>
    %c17 = arith.constant 17 : index
    %17 = memref.load %arg2[%c17] : memref<20xf32, #tpu.memory_space<smem>>
    %c18 = arith.constant 18 : index
    %18 = memref.load %arg2[%c18] : memref<20xf32, #tpu.memory_space<smem>>
    %c19 = arith.constant 19 : index
    %19 = memref.load %arg2[%c19] : memref<20xf32, #tpu.memory_space<smem>>
    %c0_0 = arith.constant 0 : index
    %20 = memref.load %arg3[%c0_0] : memref<20xf32, #tpu.memory_space<smem>>
    %c1_1 = arith.constant 1 : index
    %21 = memref.load %arg3[%c1_1] : memref<20xf32, #tpu.memory_space<smem>>
    %c2_2 = arith.constant 2 : index
    %22 = memref.load %arg3[%c2_2] : memref<20xf32, #tpu.memory_space<smem>>
    %c3_3 = arith.constant 3 : index
    %23 = memref.load %arg3[%c3_3] : memref<20xf32, #tpu.memory_space<smem>>
    %c4_4 = arith.constant 4 : index
    %24 = memref.load %arg3[%c4_4] : memref<20xf32, #tpu.memory_space<smem>>
    %c5_5 = arith.constant 5 : index
    %25 = memref.load %arg3[%c5_5] : memref<20xf32, #tpu.memory_space<smem>>
    %c6_6 = arith.constant 6 : index
    %26 = memref.load %arg3[%c6_6] : memref<20xf32, #tpu.memory_space<smem>>
    %c7_7 = arith.constant 7 : index
    %27 = memref.load %arg3[%c7_7] : memref<20xf32, #tpu.memory_space<smem>>
    %c8_8 = arith.constant 8 : index
    %28 = memref.load %arg3[%c8_8] : memref<20xf32, #tpu.memory_space<smem>>
    %c9_9 = arith.constant 9 : index
    %29 = memref.load %arg3[%c9_9] : memref<20xf32, #tpu.memory_space<smem>>
    %c10_10 = arith.constant 10 : index
    %30 = memref.load %arg3[%c10_10] : memref<20xf32, #tpu.memory_space<smem>>
    %c11_11 = arith.constant 11 : index
    %31 = memref.load %arg3[%c11_11] : memref<20xf32, #tpu.memory_space<smem>>
    %c12_12 = arith.constant 12 : index
    %32 = memref.load %arg3[%c12_12] : memref<20xf32, #tpu.memory_space<smem>>
    %c13_13 = arith.constant 13 : index
    %33 = memref.load %arg3[%c13_13] : memref<20xf32, #tpu.memory_space<smem>>
    %c14_14 = arith.constant 14 : index
    %34 = memref.load %arg3[%c14_14] : memref<20xf32, #tpu.memory_space<smem>>
    %c15_15 = arith.constant 15 : index
    %35 = memref.load %arg3[%c15_15] : memref<20xf32, #tpu.memory_space<smem>>
    %c16_16 = arith.constant 16 : index
    %36 = memref.load %arg3[%c16_16] : memref<20xf32, #tpu.memory_space<smem>>
    %c17_17 = arith.constant 17 : index
    %37 = memref.load %arg3[%c17_17] : memref<20xf32, #tpu.memory_space<smem>>
    %c18_18 = arith.constant 18 : index
    %38 = memref.load %arg3[%c18_18] : memref<20xf32, #tpu.memory_space<smem>>
    %c19_19 = arith.constant 19 : index
    %39 = memref.load %arg3[%c19_19] : memref<20xf32, #tpu.memory_space<smem>>
    %c0_20 = arith.constant 0 : index
    %40 = memref.load %arg4[%c0_20] : memref<20xf32, #tpu.memory_space<smem>>
    %c1_21 = arith.constant 1 : index
    %41 = memref.load %arg4[%c1_21] : memref<20xf32, #tpu.memory_space<smem>>
    %c2_22 = arith.constant 2 : index
    %42 = memref.load %arg4[%c2_22] : memref<20xf32, #tpu.memory_space<smem>>
    %c3_23 = arith.constant 3 : index
    %43 = memref.load %arg4[%c3_23] : memref<20xf32, #tpu.memory_space<smem>>
    %c4_24 = arith.constant 4 : index
    %44 = memref.load %arg4[%c4_24] : memref<20xf32, #tpu.memory_space<smem>>
    %c5_25 = arith.constant 5 : index
    %45 = memref.load %arg4[%c5_25] : memref<20xf32, #tpu.memory_space<smem>>
    %c6_26 = arith.constant 6 : index
    %46 = memref.load %arg4[%c6_26] : memref<20xf32, #tpu.memory_space<smem>>
    %c7_27 = arith.constant 7 : index
    %47 = memref.load %arg4[%c7_27] : memref<20xf32, #tpu.memory_space<smem>>
    %c8_28 = arith.constant 8 : index
    %48 = memref.load %arg4[%c8_28] : memref<20xf32, #tpu.memory_space<smem>>
    %c9_29 = arith.constant 9 : index
    %49 = memref.load %arg4[%c9_29] : memref<20xf32, #tpu.memory_space<smem>>
    %c10_30 = arith.constant 10 : index
    %50 = memref.load %arg4[%c10_30] : memref<20xf32, #tpu.memory_space<smem>>
    %c11_31 = arith.constant 11 : index
    %51 = memref.load %arg4[%c11_31] : memref<20xf32, #tpu.memory_space<smem>>
    %c12_32 = arith.constant 12 : index
    %52 = memref.load %arg4[%c12_32] : memref<20xf32, #tpu.memory_space<smem>>
    %c13_33 = arith.constant 13 : index
    %53 = memref.load %arg4[%c13_33] : memref<20xf32, #tpu.memory_space<smem>>
    %c14_34 = arith.constant 14 : index
    %54 = memref.load %arg4[%c14_34] : memref<20xf32, #tpu.memory_space<smem>>
    %c15_35 = arith.constant 15 : index
    %55 = memref.load %arg4[%c15_35] : memref<20xf32, #tpu.memory_space<smem>>
    %c16_36 = arith.constant 16 : index
    %56 = memref.load %arg4[%c16_36] : memref<20xf32, #tpu.memory_space<smem>>
    %c17_37 = arith.constant 17 : index
    %57 = memref.load %arg4[%c17_37] : memref<20xf32, #tpu.memory_space<smem>>
    %c18_38 = arith.constant 18 : index
    %58 = memref.load %arg4[%c18_38] : memref<20xf32, #tpu.memory_space<smem>>
    %c19_39 = arith.constant 19 : index
    %59 = memref.load %arg4[%c19_39] : memref<20xf32, #tpu.memory_space<smem>>
    %c0_40 = arith.constant 0 : index
    %60 = memref.load %arg5[%c0_40] : memref<1xf32, #tpu.memory_space<smem>>
    %c0_i32 = arith.constant 0 : i32
    %c8_i32 = arith.constant 8 : i32
    %61 = arith.muli %c0_i32, %c8_i32 : i32
    %62 = tpu.assume_multiple %61, 8 : i32
    %63 = arith.index_cast %62 : i32 to index
    %c0_41 = arith.constant 0 : index
    %64 = vector.load %arg1[%63, %c0_41] : memref<8x128xf32, #tpu.memory_space<vmem>>, vector<8x128xf32>
    %65 = vector.broadcast %60 : f32 to vector<8x128xf32>
    %66 = vector.broadcast %0 : f32 to vector<8x128xf32>
    %67 = arith.mulf %64, %66 : vector<8x128xf32>
    %68 = vector.broadcast %20 : f32 to vector<8x128xf32>
    %69 = arith.addf %67, %68 : vector<8x128xf32>
    %cst = arith.constant 0.000000e+00 : f32
    %70 = vector.broadcast %cst : f32 to vector<8x128xf32>
    %71 = arith.maximumf %69, %70 : vector<8x128xf32>
    %72 = vector.broadcast %40 : f32 to vector<8x128xf32>
    %73 = arith.mulf %71, %72 : vector<8x128xf32>
    %74 = arith.addf %65, %73 : vector<8x128xf32>
    %75 = vector.broadcast %1 : f32 to vector<8x128xf32>
    %76 = arith.mulf %64, %75 : vector<8x128xf32>
    %77 = vector.broadcast %21 : f32 to vector<8x128xf32>
    %78 = arith.addf %76, %77 : vector<8x128xf32>
    %cst_42 = arith.constant 0.000000e+00 : f32
    %79 = vector.broadcast %cst_42 : f32 to vector<8x128xf32>
    %80 = arith.maximumf %78, %79 : vector<8x128xf32>
    %81 = vector.broadcast %41 : f32 to vector<8x128xf32>
    %82 = arith.mulf %80, %81 : vector<8x128xf32>
    %83 = arith.addf %74, %82 : vector<8x128xf32>
    %84 = vector.broadcast %2 : f32 to vector<8x128xf32>
    %85 = arith.mulf %64, %84 : vector<8x128xf32>
    %86 = vector.broadcast %22 : f32 to vector<8x128xf32>
    %87 = arith.addf %85, %86 : vector<8x128xf32>
    %cst_43 = arith.constant 0.000000e+00 : f32
    %88 = vector.broadcast %cst_43 : f32 to vector<8x128xf32>
    %89 = arith.maximumf %87, %88 : vector<8x128xf32>
    %90 = vector.broadcast %42 : f32 to vector<8x128xf32>
    %91 = arith.mulf %89, %90 : vector<8x128xf32>
    %92 = arith.addf %83, %91 : vector<8x128xf32>
    %93 = vector.broadcast %3 : f32 to vector<8x128xf32>
    %94 = arith.mulf %64, %93 : vector<8x128xf32>
    %95 = vector.broadcast %23 : f32 to vector<8x128xf32>
    %96 = arith.addf %94, %95 : vector<8x128xf32>
    %cst_44 = arith.constant 0.000000e+00 : f32
    %97 = vector.broadcast %cst_44 : f32 to vector<8x128xf32>
    %98 = arith.maximumf %96, %97 : vector<8x128xf32>
    %99 = vector.broadcast %43 : f32 to vector<8x128xf32>
    %100 = arith.mulf %98, %99 : vector<8x128xf32>
    %101 = arith.addf %92, %100 : vector<8x128xf32>
    %102 = vector.broadcast %4 : f32 to vector<8x128xf32>
    %103 = arith.mulf %64, %102 : vector<8x128xf32>
    %104 = vector.broadcast %24 : f32 to vector<8x128xf32>
    %105 = arith.addf %103, %104 : vector<8x128xf32>
    %cst_45 = arith.constant 0.000000e+00 : f32
    %106 = vector.broadcast %cst_45 : f32 to vector<8x128xf32>
    %107 = arith.maximumf %105, %106 : vector<8x128xf32>
    %108 = vector.broadcast %44 : f32 to vector<8x128xf32>
    %109 = arith.mulf %107, %108 : vector<8x128xf32>
    %110 = arith.addf %101, %109 : vector<8x128xf32>
    %111 = vector.broadcast %5 : f32 to vector<8x128xf32>
    %112 = arith.mulf %64, %111 : vector<8x128xf32>
    %113 = vector.broadcast %25 : f32 to vector<8x128xf32>
    %114 = arith.addf %112, %113 : vector<8x128xf32>
    %cst_46 = arith.constant 0.000000e+00 : f32
    %115 = vector.broadcast %cst_46 : f32 to vector<8x128xf32>
    %116 = arith.maximumf %114, %115 : vector<8x128xf32>
    %117 = vector.broadcast %45 : f32 to vector<8x128xf32>
    %118 = arith.mulf %116, %117 : vector<8x128xf32>
    %119 = arith.addf %110, %118 : vector<8x128xf32>
    %120 = vector.broadcast %6 : f32 to vector<8x128xf32>
    %121 = arith.mulf %64, %120 : vector<8x128xf32>
    %122 = vector.broadcast %26 : f32 to vector<8x128xf32>
    %123 = arith.addf %121, %122 : vector<8x128xf32>
    %cst_47 = arith.constant 0.000000e+00 : f32
    %124 = vector.broadcast %cst_47 : f32 to vector<8x128xf32>
    %125 = arith.maximumf %123, %124 : vector<8x128xf32>
    %126 = vector.broadcast %46 : f32 to vector<8x128xf32>
    %127 = arith.mulf %125, %126 : vector<8x128xf32>
    %128 = arith.addf %119, %127 : vector<8x128xf32>
    %129 = vector.broadcast %7 : f32 to vector<8x128xf32>
    %130 = arith.mulf %64, %129 : vector<8x128xf32>
    %131 = vector.broadcast %27 : f32 to vector<8x128xf32>
    %132 = arith.addf %130, %131 : vector<8x128xf32>
    %cst_48 = arith.constant 0.000000e+00 : f32
    %133 = vector.broadcast %cst_48 : f32 to vector<8x128xf32>
    %134 = arith.maximumf %132, %133 : vector<8x128xf32>
    %135 = vector.broadcast %47 : f32 to vector<8x128xf32>
    %136 = arith.mulf %134, %135 : vector<8x128xf32>
    %137 = arith.addf %128, %136 : vector<8x128xf32>
    %138 = vector.broadcast %8 : f32 to vector<8x128xf32>
    %139 = arith.mulf %64, %138 : vector<8x128xf32>
    %140 = vector.broadcast %28 : f32 to vector<8x128xf32>
    %141 = arith.addf %139, %140 : vector<8x128xf32>
    %cst_49 = arith.constant 0.000000e+00 : f32
    %142 = vector.broadcast %cst_49 : f32 to vector<8x128xf32>
    %143 = arith.maximumf %141, %142 : vector<8x128xf32>
    %144 = vector.broadcast %48 : f32 to vector<8x128xf32>
    %145 = arith.mulf %143, %144 : vector<8x128xf32>
    %146 = arith.addf %137, %145 : vector<8x128xf32>
    %147 = vector.broadcast %9 : f32 to vector<8x128xf32>
    %148 = arith.mulf %64, %147 : vector<8x128xf32>
    %149 = vector.broadcast %29 : f32 to vector<8x128xf32>
    %150 = arith.addf %148, %149 : vector<8x128xf32>
    %cst_50 = arith.constant 0.000000e+00 : f32
    %151 = vector.broadcast %cst_50 : f32 to vector<8x128xf32>
    %152 = arith.maximumf %150, %151 : vector<8x128xf32>
    %153 = vector.broadcast %49 : f32 to vector<8x128xf32>
    %154 = arith.mulf %152, %153 : vector<8x128xf32>
    %155 = arith.addf %146, %154 : vector<8x128xf32>
    %156 = vector.broadcast %10 : f32 to vector<8x128xf32>
    %157 = arith.mulf %64, %156 : vector<8x128xf32>
    %158 = vector.broadcast %30 : f32 to vector<8x128xf32>
    %159 = arith.addf %157, %158 : vector<8x128xf32>
    %cst_51 = arith.constant 0.000000e+00 : f32
    %160 = vector.broadcast %cst_51 : f32 to vector<8x128xf32>
    %161 = arith.maximumf %159, %160 : vector<8x128xf32>
    %162 = vector.broadcast %50 : f32 to vector<8x128xf32>
    %163 = arith.mulf %161, %162 : vector<8x128xf32>
    %164 = arith.addf %155, %163 : vector<8x128xf32>
    %165 = vector.broadcast %11 : f32 to vector<8x128xf32>
    %166 = arith.mulf %64, %165 : vector<8x128xf32>
    %167 = vector.broadcast %31 : f32 to vector<8x128xf32>
    %168 = arith.addf %166, %167 : vector<8x128xf32>
    %cst_52 = arith.constant 0.000000e+00 : f32
    %169 = vector.broadcast %cst_52 : f32 to vector<8x128xf32>
    %170 = arith.maximumf %168, %169 : vector<8x128xf32>
    %171 = vector.broadcast %51 : f32 to vector<8x128xf32>
    %172 = arith.mulf %170, %171 : vector<8x128xf32>
    %173 = arith.addf %164, %172 : vector<8x128xf32>
    %174 = vector.broadcast %12 : f32 to vector<8x128xf32>
    %175 = arith.mulf %64, %174 : vector<8x128xf32>
    %176 = vector.broadcast %32 : f32 to vector<8x128xf32>
    %177 = arith.addf %175, %176 : vector<8x128xf32>
    %cst_53 = arith.constant 0.000000e+00 : f32
    %178 = vector.broadcast %cst_53 : f32 to vector<8x128xf32>
    %179 = arith.maximumf %177, %178 : vector<8x128xf32>
    %180 = vector.broadcast %52 : f32 to vector<8x128xf32>
    %181 = arith.mulf %179, %180 : vector<8x128xf32>
    %182 = arith.addf %173, %181 : vector<8x128xf32>
    %183 = vector.broadcast %13 : f32 to vector<8x128xf32>
    %184 = arith.mulf %64, %183 : vector<8x128xf32>
    %185 = vector.broadcast %33 : f32 to vector<8x128xf32>
    %186 = arith.addf %184, %185 : vector<8x128xf32>
    %cst_54 = arith.constant 0.000000e+00 : f32
    %187 = vector.broadcast %cst_54 : f32 to vector<8x128xf32>
    %188 = arith.maximumf %186, %187 : vector<8x128xf32>
    %189 = vector.broadcast %53 : f32 to vector<8x128xf32>
    %190 = arith.mulf %188, %189 : vector<8x128xf32>
    %191 = arith.addf %182, %190 : vector<8x128xf32>
    %192 = vector.broadcast %14 : f32 to vector<8x128xf32>
    %193 = arith.mulf %64, %192 : vector<8x128xf32>
    %194 = vector.broadcast %34 : f32 to vector<8x128xf32>
    %195 = arith.addf %193, %194 : vector<8x128xf32>
    %cst_55 = arith.constant 0.000000e+00 : f32
    %196 = vector.broadcast %cst_55 : f32 to vector<8x128xf32>
    %197 = arith.maximumf %195, %196 : vector<8x128xf32>
    %198 = vector.broadcast %54 : f32 to vector<8x128xf32>
    %199 = arith.mulf %197, %198 : vector<8x128xf32>
    %200 = arith.addf %191, %199 : vector<8x128xf32>
    %201 = vector.broadcast %15 : f32 to vector<8x128xf32>
    %202 = arith.mulf %64, %201 : vector<8x128xf32>
    %203 = vector.broadcast %35 : f32 to vector<8x128xf32>
    %204 = arith.addf %202, %203 : vector<8x128xf32>
    %cst_56 = arith.constant 0.000000e+00 : f32
    %205 = vector.broadcast %cst_56 : f32 to vector<8x128xf32>
    %206 = arith.maximumf %204, %205 : vector<8x128xf32>
    %207 = vector.broadcast %55 : f32 to vector<8x128xf32>
    %208 = arith.mulf %206, %207 : vector<8x128xf32>
    %209 = arith.addf %200, %208 : vector<8x128xf32>
    %210 = vector.broadcast %16 : f32 to vector<8x128xf32>
    %211 = arith.mulf %64, %210 : vector<8x128xf32>
    %212 = vector.broadcast %36 : f32 to vector<8x128xf32>
    %213 = arith.addf %211, %212 : vector<8x128xf32>
    %cst_57 = arith.constant 0.000000e+00 : f32
    %214 = vector.broadcast %cst_57 : f32 to vector<8x128xf32>
    %215 = arith.maximumf %213, %214 : vector<8x128xf32>
    %216 = vector.broadcast %56 : f32 to vector<8x128xf32>
    %217 = arith.mulf %215, %216 : vector<8x128xf32>
    %218 = arith.addf %209, %217 : vector<8x128xf32>
    %219 = vector.broadcast %17 : f32 to vector<8x128xf32>
    %220 = arith.mulf %64, %219 : vector<8x128xf32>
    %221 = vector.broadcast %37 : f32 to vector<8x128xf32>
    %222 = arith.addf %220, %221 : vector<8x128xf32>
    %cst_58 = arith.constant 0.000000e+00 : f32
    %223 = vector.broadcast %cst_58 : f32 to vector<8x128xf32>
    %224 = arith.maximumf %222, %223 : vector<8x128xf32>
    %225 = vector.broadcast %57 : f32 to vector<8x128xf32>
    %226 = arith.mulf %224, %225 : vector<8x128xf32>
    %227 = arith.addf %218, %226 : vector<8x128xf32>
    %228 = vector.broadcast %18 : f32 to vector<8x128xf32>
    %229 = arith.mulf %64, %228 : vector<8x128xf32>
    %230 = vector.broadcast %38 : f32 to vector<8x128xf32>
    %231 = arith.addf %229, %230 : vector<8x128xf32>
    %cst_59 = arith.constant 0.000000e+00 : f32
    %232 = vector.broadcast %cst_59 : f32 to vector<8x128xf32>
    %233 = arith.maximumf %231, %232 : vector<8x128xf32>
    %234 = vector.broadcast %58 : f32 to vector<8x128xf32>
    %235 = arith.mulf %233, %234 : vector<8x128xf32>
    %236 = arith.addf %227, %235 : vector<8x128xf32>
    %237 = vector.broadcast %19 : f32 to vector<8x128xf32>
    %238 = arith.mulf %64, %237 : vector<8x128xf32>
    %239 = vector.broadcast %39 : f32 to vector<8x128xf32>
    %240 = arith.addf %238, %239 : vector<8x128xf32>
    %cst_60 = arith.constant 0.000000e+00 : f32
    %241 = vector.broadcast %cst_60 : f32 to vector<8x128xf32>
    %242 = arith.maximumf %240, %241 : vector<8x128xf32>
    %243 = vector.broadcast %59 : f32 to vector<8x128xf32>
    %244 = arith.mulf %242, %243 : vector<8x128xf32>
    %245 = arith.addf %236, %244 : vector<8x128xf32>
    %246 = arith.index_cast %62 : i32 to index
    %c0_61 = arith.constant 0 : index
    %247 = vector.load %arg6[%246, %c0_61] : memref<8x128xf32, #tpu.memory_space<vmem>>, vector<8x128xf32>
    tpu.vector_store %arg6[%246, %c0_61], %245 {strides = array<i32>} : memref<8x128xf32, #tpu.memory_space<vmem>>, vector<8x128xf32>,
    %c1_i32 = arith.constant 1 : i32
    return
  }
  func.func @transform_0(%arg0: i32) -> (i32, i32) {
    %c0_i32 = arith.constant 0 : i32
    %c0_i32_0 = arith.constant 0 : i32
    return %arg0, %c0_i32 : i32, i32
  }
  func.func @transform_1(%arg0: i32) -> i32 {
    %c0_i32 = arith.constant 0 : i32
    %c0_i32_0 = arith.constant 0 : i32
    return %c0_i32 : i32
  }
  func.func @transform_2(%arg0: i32) -> i32 {
    %c0_i32 = arith.constant 0 : i32
    %c0_i32_0 = arith.constant 0 : i32
    return %c0_i32 : i32
  }
  func.func @transform_3(%arg0: i32) -> i32 {
    %c0_i32 = arith.constant 0 : i32
    %c0_i32_0 = arith.constant 0 : i32
    return %c0_i32 : i32
  }
  func.func @transform_4(%arg0: i32) -> i32 {
    %c0_i32 = arith.constant 0 : i32
    %c0_i32_0 = arith.constant 0 : i32
    return %c0_i32 : i32
  }
  func.func @transform_5(%arg0: i32) -> (i32, i32) {
    %c0_i32 = arith.constant 0 : i32
    %c0_i32_0 = arith.constant 0 : i32
    return %arg0, %c0_i32 : i32, i32
  }
}

</mosaic_0001>

<bundles_post_ra>
// kernel: net_forward.1
= control target key start
LH: loop header
LB: loop body
LE: loop exit
PB: predicated region body
PF: predicated region fallthrough
CT: control target
= control target key end

     0   :  { %11 = vsyncpa [#allocation5], 0  ;;  %s665_s0 = inlined_call_operand.vmem [shape: f32[8,128], index: 0, kind: input, shape index: {}]   ;;  %s666_s1 = inlined_call_operand.vmem [shape: f32[20], index: 1, kind: input, shape index: {}]   ;;  %s667_s2 = inlined_call_operand.vmem [shape: f32[20], index: 2, kind: input, shape index: {}]   ;;  %s668_s3 = inlined_call_operand.vmem [shape: f32[20], index: 3, kind: input, shape index: {}]   ;;  %s669_s4 = inlined_call_operand.<no memory space> [shape: f32[1], index: 4, kind: input, shape index: {}]   ;;  %s670_s5 = inlined_call_operand.hbm [shape: f32[8,128], index: 5, kind: output, shape index: {}]  }
   0x1   :  { %12 = vsyncpa [#allocation7], 0  ;;  %s32_s20 = sshll.u32 %s667_s2, 4  ;;  %s33_s20 = int_to_ptr.vmem [resolvable:$true] %s32_s20 }
   0x2   :  { %13 = vsyncpa [#allocation4], 0  ;;  %s22_s23 = sshll.u32 %s666_s1, 4  ;;  %s359_s24 = scalar_lea.vmem %s33_s20, 16  ;;  %s23_s23 = int_to_ptr.vmem [resolvable:$true] %s22_s23 }
   0x3   :  { %p360_p0 = scmp.ne.s32.totalorder %s33_s20, %s359_s24  ;;  %p364_p1 = scmp.lt.s32.totalorder %s33_s20, %s33_s20 }
   0x4   :  { %p365_p2 = scmp.lt.s32.totalorder %s359_s24, %s359_s24 }
   0x6   :  { %p366_p3 = por %p365_p2, %p364_p1 }
   0x8   :  { %p367_p4 = pnand %p366_p3, %p360_p0 }
   0xa   :  { %370 = shalt.err (!%p367_p4)
}
   0xb   :  { %s423_s25 = smov [#allocation6]   ;;  %s371_s26 = scalar_lea.vmem %s23_s23, 16 }
   0xc   :  { %35 = dma.vmem_to_smem %s33_s20, 16, %s423_s25, [#allocation7]  }
   0xd   :  { %p372_p5 = scmp.ne.s32.totalorder %s23_s23, %s371_s26  ;;  %p376_p6 = scmp.lt.s32.totalorder %s23_s23, %s23_s23 }
   0xe   :  { %p377_p7 = scmp.lt.s32.totalorder %s371_s26, %s371_s26 }
  0x10   :  { %p378_p8 = por %p377_p7, %p376_p6 }
  0x12   :  { %p379_p9 = pnand %p378_p8, %p372_p5 }
  0x14   :  { %382 = shalt.err (!%p379_p9)
}
  0x15   :  { %s424_s2 = smov [#allocation3]   ;;  %s42_s28 = sshll.u32 %s668_s3, 4  ;;  %s43_s28 = int_to_ptr.vmem [resolvable:$true] %s42_s28 }
  0x16   :  { %25 = dma.vmem_to_smem %s23_s23, 16, %s424_s2, [#allocation5]  }
  0x17   :  { %s383_s29 = scalar_lea.vmem %s43_s28, 16  ;;  %p388_p11 = scmp.lt.s32.totalorder %s43_s28, %s43_s28 }
  0x18   :  { %p384_p10 = scmp.ne.s32.totalorder %s43_s28, %s383_s29  ;;  %p389_p12 = scmp.lt.s32.totalorder %s383_s29, %s383_s29 }
  0x1a   :  { %p390_p13 = por %p389_p12, %p388_p11 }
  0x1c   :  { %p391_p0 = pnand %p390_p13, %p384_p10 }
  0x1e   :  { %394 = shalt.err (!%p391_p0)
}
  0x1f   :  { %s425_s30 = smov [#allocation8]  }
  0x20   :  { %45 = dma.vmem_to_smem %s43_s28, 16, %s425_s30, [#allocation7]  }
  0x21   :  { %417 = dma.done.wait [#allocation5], 16  }
  0x22   :  { %418 = vsyncadd [#allocation5], 4294967280 }
  0x23   :  { %419 = dma.done.wait [#allocation7], 32  }
  0x24   :  { %420 = vsyncadd [#allocation7], 4294967264 }
  0x25   :  { %57 = sfence }
  0x26   :  { %s58_s6 = sld [smem:[#allocation3]]  ;;  %s298_s7 = sld [smem:[#allocation3 + $0x1]]  ;;  %v479_v0 = vld [vmem:[%s665_s0] sm:$0xff]  ;;  %v120_v27 = vstv %s669_s4 }
  0x27   :  { %s299_s8 = sld [smem:[#allocation3 + $0x2]]  ;;  %s466_s9 = sld [smem:[#allocation3 + $0x3]] }
  0x28   :  { %s468_s3 = sld [smem:[#allocation3 + $0x4]]  ;;  %s78_s10 = sld [smem:[#allocation6]] }
  0x29   :  { %s317_s11 = sld [smem:[#allocation6 + $0x1]]  ;;  %s470_s12 = sld [smem:[#allocation3 + $0x5]] }
  0x2a   :  { %s472_s13 = sld [smem:[#allocation6 + $0x2]]  ;;  %s474_s14 = sld [smem:[#allocation6 + $0x3]] }
  0x2b   :  { %s481_s17 = sld [smem:[#allocation3 + $0x6]]  ;;  %s483_s18 = sld [smem:[#allocation3 + $0x7]] }
  0x2c   :  { %v121_v1 = vstv %s58_s6  ;;  %v129_v2 = vstv %s298_s7  ;;  %s485_s19 = sld [smem:[#allocation6 + $0x4]]  ;;  %s487_s20 = sld [smem:[#allocation6 + $0x5]] }
  0x2d   :  { %v137_v3 = vstv %s299_s8  ;;  %v122_v4 = vmul.f32 %v121_v1, %v479_v0  ;;  %v130_v5 = vmul.f32 %v129_v2, %v479_v0  ;;  %v145_v8 = vstv %s466_s9  ;;  %s492_s0 = sld [smem:[#allocation3 + $0x8]]  ;;  %s494_s21 = sld [smem:[#allocation3 + $0x9]] }
  0x2e   :  { %v123_v6 = vstv %s78_s10  ;;  %v138_v9 = vmul.f32 %v137_v3, %v479_v0  ;;  %s497_s22 = sld [smem:[#allocation3 + $0xa]]  ;;  %s499_s23 = sld [smem:[#allocation6 + $0x6]]  ;;  %v153_v11 = vstv %s468_s3  ;;  %v146_v14 = vmul.f32 %v145_v8, %v479_v0 }
  0x2f   :  { %v131_v7 = vstv %s317_s11  ;;  %s503_s24 = sld [smem:[#allocation3 + $0xb]]  ;;  %s505_s25 = sld [smem:[#allocation6 + $0x7]]  ;;  %v124_v12 = vadd.f32 %v123_v6, %v122_v4  ;;  %v161_v15 = vstv %s470_s12  ;;  %v154_v18 = vmul.f32 %v153_v11, %v479_v0 }
  0x30   :  { %v139_v10 = vstv %s472_s13  ;;  %v132_v13 = vadd.f32 %v131_v7, %v130_v5  ;;  %s509_s26 = sld [smem:[#allocation8]]  ;;  %s511_s2 = sld [smem:[#allocation8 + $0x1]]  ;;  %v147_v16 = vstv %s474_s14  ;;  %v162_v22 = vmul.f32 %v161_v15, %v479_v0 }
  0x31   :  { %s514_s1 = sld [smem:[#allocation8 + $0x2]]  ;;  %s516_s27 = sld [smem:[#allocation8 + $0x3]]  ;;  %v140_v17 = vadd.f32 %v139_v10, %v138_v9  ;;  %v169_v19 = vstv %s481_s17  ;;  %v177_v20 = vstv %s483_s18  ;;  %v125_v23 = vmax.f32 %v124_v12, 0.0 }
  0x32   :  { %s521_s28 = sld [smem:[#allocation6 + $0x8]]  ;;  %s523_s29 = sld [smem:[#allocation8 + $0x4]]  ;;  %v155_v21 = vstv %s485_s19  ;;  %v133_v24 = vmax.f32 %v132_v13, 0.0  ;;  %v148_v25 = vadd.f32 %v147_v16, %v146_v14  ;;  %v163_v26 = vstv %s487_s20 }
  0x33   :  { %s527_s30 = sld [smem:[#allocation3 + $0xc]]  ;;  %s530_s6 = sld [smem:[#allocation6 + $0x9]]  ;;  %v170_v28 = vmul.f32 %v169_v19, %v479_v0  ;;  %v178_v29 = vmul.f32 %v177_v20, %v479_v0  ;;  %v141_v30 = vmax.f32 %v140_v17, 0.0  ;;  %v156_v31 = vadd.f32 %v155_v21, %v154_v18 }
  0x34   :  { %s532_s7 = sld [smem:[#allocation8 + $0x5]]  ;;  %v185_v32 = vstv %s492_s0  ;;  %v193_v33 = vstv %s494_s21  ;;  %s543_s10 = sld [smem:[#allocation6 + $0xa]]  ;;  %v164_v36 = vadd.f32 %v163_v26, %v162_v22  ;;  %v171_v37 = vstv %s499_s23 }
  0x35   :  { %s539_s3 = sld [smem:[#allocation3 + $0xd]]  ;;  %s545_s11 = sld [smem:[#allocation8 + $0x6]]  ;;  %v149_v41 = vmax.f32 %v148_v25, 0.0  ;;  %v179_v43 = vstv %s505_s25  ;;  %v186_v44 = vmul.f32 %v185_v32, %v479_v0  ;;  %v201_v45 = vstv %s497_s22 }
  0x36   :  { %v126_v34 = vstv %s509_s26  ;;  %v134_v35 = vstv %s511_s2  ;;  %s550_s4 = sld [smem:[#allocation3 + $0xe]]  ;;  %s553_s12 = sld [smem:[#allocation6 + $0xb]]  ;;  %v157_v48 = vmax.f32 %v156_v31, 0.0  ;;  %v172_v49 = vadd.f32 %v171_v37, %v170_v28 }
  0x37   :  { %v127_v38 = vmul.f32 %v126_v34, %v125_v23  ;;  %v135_v39 = vmul.f32 %v134_v35, %v133_v24  ;;  %v142_v40 = vstv %s514_s1  ;;  %s555_s13 = sld [smem:[#allocation8 + $0x7]]  ;;  %v150_v42 = vstv %s516_s27  ;;  %s563_s15 = sld [smem:[#allocation6 + $0xc]] }
  0x38   :  { %s561_s14 = sld [smem:[#allocation3 + $0xf]]  ;;  %v143_v47 = vmul.f32 %v142_v40, %v141_v30  ;;  %s565_s16 = sld [smem:[#allocation8 + $0x8]]  ;;  %v158_v50 = vstv %s523_s29  ;;  %v187_v51 = vstv %s521_s28  ;;  %v194_v52 = vmul.f32 %v193_v33, %v479_v0 }
  0x39   :  { %v128_v46 = vadd.f32 %v127_v38, %v120_v27  ;;  %v209_v53 = vstv %s503_s24  ;;  %s571_s17 = sld [smem:[#allocation3 + $0x10]]  ;;  %v151_v55 = vmul.f32 %v150_v42, %v149_v41  ;;  %v165_v56 = vmax.f32 %v164_v36, 0.0  ;;  %s573_s18 = sld [smem:[#allocation6 + $0xd]] }
  0x3a   :  { %v180_v57 = vadd.f32 %v179_v43, %v178_v29  ;;  %s575_s19 = sld [smem:[#allocation8 + $0x9]]  ;;  %v166_v58 = vstv %s532_s7  ;;  %v195_v59 = vstv %s530_s6  ;;  %v202_v60 = vmul.f32 %v201_v45, %v479_v0  ;;  %s583_s0 = sld [smem:[#allocation6 + $0xe]] }
  0x3b   :  { %v136_v54 = vadd.f32 %v135_v39, %v128_v46  ;;  %v217_v61 = vstv %s527_s30  ;;  %s581_s20 = sld [smem:[#allocation3 + $0x11]]  ;;  %v159_v63 = vmul.f32 %v158_v50, %v157_v48  ;;  %v173_v1 = vmax.f32 %v172_v49, 0.0  ;;  %s585_s21 = sld [smem:[#allocation8 + $0xa]] }
  0x3c   :  { %v188_v2 = vadd.f32 %v187_v51, %v186_v44  ;;  %v174_v3 = vstv %s545_s11  ;;  %v203_v4 = vstv %s543_s10  ;;  %v210_v5 = vmul.f32 %v209_v53, %v479_v0  ;;  %s591_s22 = sld [smem:[#allocation3 + $0x12]]  ;;  %s593_s23 = sld [smem:[#allocation6 + $0xf]] }
  0x3d   :  { %v144_v62 = vadd.f32 %v143_v47, %v136_v54  ;;  %v225_v6 = vstv %s539_s3  ;;  %v167_v8 = vmul.f32 %v166_v58, %v165_v56  ;;  %v181_v9 = vmax.f32 %v180_v57, 0.0  ;;  %s595_s24 = sld [smem:[#allocation8 + $0xb]]  ;;  %s603_s26 = sld [smem:[#allocation6 + $0x10]] }
  0x3e   :  { %v196_v10 = vadd.f32 %v195_v59, %v194_v52  ;;  %v182_v11 = vstv %s555_s13  ;;  %v211_v12 = vstv %s553_s12  ;;  %v218_v13 = vmul.f32 %v217_v61, %v479_v0  ;;  %s601_s25 = sld [smem:[#allocation3 + $0x13]]  ;;  %s605_s2 = sld [smem:[#allocation8 + $0xc]] }
  0x3f   :  { %v152_v7 = vadd.f32 %v151_v55, %v144_v62  ;;  %v233_v14 = vstv %s550_s4  ;;  %v175_v16 = vmul.f32 %v174_v3, %v173_v1  ;;  %v189_v17 = vmax.f32 %v188_v2, 0.0  ;;  %s611_s1 = sld [smem:[#allocation6 + $0x11]]  ;;  %s613_s27 = sld [smem:[#allocation8 + $0xd]] }
  0x40   :  { %v204_v18 = vadd.f32 %v203_v4, %v202_v60  ;;  %v190_v19 = vstv %s565_s16  ;;  %v219_v20 = vstv %s563_s15  ;;  %v226_v21 = vmul.f32 %v225_v6, %v479_v0  ;;  %s619_s28 = sld [smem:[#allocation6 + $0x12]]  ;;  %s621_s29 = sld [smem:[#allocation8 + $0xe]] }
  0x41   :  { %v160_v15 = vadd.f32 %v159_v63, %v152_v7  ;;  %v241_v22 = vstv %s561_s14  ;;  %v183_v24 = vmul.f32 %v182_v11, %v181_v9  ;;  %v197_v25 = vmax.f32 %v196_v10, 0.0  ;;  %s627_s30 = sld [smem:[#allocation6 + $0x13]]  ;;  %s629_s6 = sld [smem:[#allocation8 + $0xf]] }
  0x42   :  { %v212_v26 = vadd.f32 %v211_v12, %v210_v5  ;;  %v198_v27 = vstv %s575_s19  ;;  %v227_v28 = vstv %s573_s18  ;;  %v234_v29 = vmul.f32 %v233_v14, %v479_v0  ;;  %s635_s7 = sld [smem:[#allocation8 + $0x10]]  ;;  %s641_s8 = sld [smem:[#allocation8 + $0x11]] }
  0x43   :  { %v168_v23 = vadd.f32 %v167_v8, %v160_v15  ;;  %v249_v30 = vstv %s571_s17  ;;  %v191_v32 = vmul.f32 %v190_v19, %v189_v17  ;;  %v205_v33 = vmax.f32 %v204_v18, 0.0  ;;  %s353_s9 = sld [smem:[#allocation8 + $0x12]]  ;;  %s354_s3 = sld [smem:[#allocation8 + $0x13]] }
  0x44   :  { %v220_v34 = vadd.f32 %v219_v20, %v218_v13  ;;  %v206_v35 = vstv %s585_s21  ;;  %v235_v36 = vstv %s583_s0  ;;  %v242_v37 = vmul.f32 %v241_v22, %v479_v0  ;;  %s426_s10 = smov [#allocation9]  }
  0x45   :  { %v176_v31 = vadd.f32 %v175_v16, %v168_v23  ;;  %v257_v38 = vstv %s581_s20  ;;  %v199_v40 = vmul.f32 %v198_v27, %v197_v25  ;;  %v213_v41 = vmax.f32 %v212_v26, 0.0  ;;  %s288_s11 = sshll.u32 %s426_s10, 4  ;;  %s289_s11 = int_to_ptr.vmem [resolvable:$true] %s288_s11 }
  0x46   :  { %v228_v42 = vadd.f32 %v227_v28, %v226_v21  ;;  %v214_v43 = vstv %s595_s24  ;;  %v243_v44 = vstv %s593_s23  ;;  %v250_v45 = vmul.f32 %v249_v30, %v479_v0  ;;  %s395_s4 = scalar_lea.vmem %s289_s11, 128  ;;  %p400_p2 = scmp.lt.s32.totalorder %s289_s11, %s289_s11 }
  0x47   :  { %v184_v39 = vadd.f32 %v183_v24, %v176_v31  ;;  %v265_v46 = vstv %s591_s22  ;;  %v207_v48 = vmul.f32 %v206_v35, %v205_v33  ;;  %v221_v49 = vmax.f32 %v220_v34, 0.0  ;;  %p396_p1 = scmp.ne.s32.totalorder %s289_s11, %s395_s4  ;;  %p401_p3 = scmp.lt.s32.totalorder %s395_s4, %s395_s4 }
  0x48   :  { %v236_v50 = vadd.f32 %v235_v36, %v234_v29  ;;  %v222_v51 = vstv %s605_s2  ;;  %v251_v52 = vstv %s603_s26  ;;  %v258_v53 = vmul.f32 %v257_v38, %v479_v0 }
  0x49   :  { %v192_v47 = vadd.f32 %v191_v32, %v184_v39  ;;  %v273_v54 = vstv %s601_s25  ;;  %v215_v56 = vmul.f32 %v214_v43, %v213_v41  ;;  %v229_v57 = vmax.f32 %v228_v42, 0.0  ;;  %p402_p4 = por %p401_p3, %p400_p2 }
  0x4a   :  { %v244_v58 = vadd.f32 %v243_v44, %v242_v37  ;;  %v230_v59 = vstv %s613_s27  ;;  %v259_v60 = vstv %s611_s1  ;;  %v266_v61 = vmul.f32 %v265_v46, %v479_v0 }
  0x4b   :  { %v200_v55 = vadd.f32 %v199_v40, %v192_v47  ;;  %v223_v63 = vmul.f32 %v222_v51, %v221_v49  ;;  %v237_v1 = vmax.f32 %v236_v50, 0.0  ;;  %v252_v2 = vadd.f32 %v251_v52, %v250_v45  ;;  %p403_p5 = pnand %p402_p4, %p396_p1 }
  0x4c   :  { %v238_v3 = vstv %s621_s29  ;;  %v267_v4 = vstv %s619_s28  ;;  %v274_v5 = vmul.f32 %v273_v54, %v479_v0  ;;  %v231_v7 = vmul.f32 %v230_v59, %v229_v57 }
  0x4d   :  { %v208_v62 = vadd.f32 %v207_v48, %v200_v55  ;;  %v245_v8 = vmax.f32 %v244_v58, 0.0  ;;  %v260_v9 = vadd.f32 %v259_v60, %v258_v53  ;;  %v246_v10 = vstv %s629_s6 }
  0x4e   :  { %v275_v11 = vstv %s627_s30  ;;  %v239_v13 = vmul.f32 %v238_v3, %v237_v1  ;;  %v253_v14 = vmax.f32 %v252_v2, 0.0  ;;  %v268_v15 = vadd.f32 %v267_v4, %v266_v61 }
  0x4f   :  { %v216_v6 = vadd.f32 %v215_v56, %v208_v62  ;;  %v254_v16 = vstv %s635_s7  ;;  %v247_v18 = vmul.f32 %v246_v10, %v245_v8  ;;  %v261_v19 = vmax.f32 %v260_v9, 0.0 }
  0x50   :  { %v276_v20 = vadd.f32 %v275_v11, %v274_v5  ;;  %v262_v21 = vstv %s641_s8  ;;  %v255_v0 = vmul.f32 %v254_v16, %v253_v14  ;;  %v269_v23 = vmax.f32 %v268_v15, 0.0 }
  0x51   :  { %v224_v12 = vadd.f32 %v223_v63, %v216_v6  ;;  %v270_v24 = vstv %s353_s9  ;;  %v263_v26 = vmul.f32 %v262_v21, %v261_v19  ;;  %v278_v28 = vstv %s354_s3 }
  0x52   :  { %v277_v27 = vmax.f32 %v276_v20, 0.0  ;;  %v271_v30 = vmul.f32 %v270_v24, %v269_v23 }
  0x53   :  { %v232_v17 = vadd.f32 %v231_v7, %v224_v12 }
  0x54   :  { %v279_v32 = vmul.f32 %v278_v28, %v277_v27 }
  0x55   :  { %v240_v22 = vadd.f32 %v239_v13, %v232_v17 }
  0x57   :  { %v248_v25 = vadd.f32 %v247_v18, %v240_v22 }
  0x59   :  { %v256_v29 = vadd.f32 %v255_v0, %v248_v25 }
  0x5b   :  { %v264_v31 = vadd.f32 %v263_v26, %v256_v29 }
  0x5d   :  { %v272_v33 = vadd.f32 %v271_v30, %v264_v31 }
  0x5f   :  { %v280_v34 = vadd.f32 %v279_v32, %v272_v33 }
  0x61   :  { %281 = vst [vmem:[#allocation9] sm:$0xff] %v280_v34 }
  0x62   :  { %406 = shalt.err (!%p403_p5)
}
  0x63   :  { %s407_s14 = scalar_lea.hbm %s670_s5, 128 }
  0x64   :  { %p408_p6 = scmp.ne.s32.totalorder %s670_s5, %s407_s14  ;;  %p411_p7 = scmp.lt.u32.totalorder %s407_s14, %s670_s5 }
  0x66   :  { %p413_p8 = pnand %p411_p7, %p408_p6 }
  0x68   :  { %416 = shalt.err (!%p413_p8)
}
  0x69   :  { %291 = dma.vmem_to_hbm [thread:$0]  %s289_s11, 128, %s670_s5, [#allocation4]  }
  0x6a   :  { %421 = dma.done.wait [#allocation4], 128  }
  0x6b   :  { %422 = vsyncadd [#allocation4], 4294967168 }
  0x6c   :  { %295 = vsyncpa [#allocation4], 1 }
  0x6d   :  { %296 = vsyncpa [#allocation5], 1 }
  0x6e   :  { %297 = vsyncpa [#allocation7], 1 }

</bundles_post_ra>
